<compile_context>
chip_gen: v7x
topology: tpu7x:2x2x1
jax: 0.10.0
libtpu: 0.0.40
codegen_flags: <defaults>
</compile_context>

<pallas_src>
import functools
import math

import jax
import jax.numpy as jnp
from jax import lax
from jax.experimental import pallas as pl
from jax.experimental.pallas import tpu as pltpu


# ----------------------------- Pallas kernel -------------------------------
def _gru_layer_kernel(x_ref, wih_ref, whh_ref, bih_ref, bhh_ref,
                      out_ref, gx_ref, *, seq, batch, hid, num_dir):
    """One full GRU layer (all directions fused) in a single invocation.

    x_ref   : (seq*batch, inp)         time-major flattened, compute dtype
    wih_ref : (inp, num_dir*3H)        concatenated W_ih^T, compute dtype
    whh_ref : (num_dir, H, 3H)         W_hh^T per direction, compute dtype
    bih_ref : (1, num_dir*3H)          f32
    bhh_ref : (num_dir, 1, 3H)         f32
    out_ref : (seq, batch, num_dir*H)  f32  (fwd -> [..., :H], bwd -> [..., H:])
    gx_ref  : (seq*batch, num_dir*3H)  VMEM scratch, compute dtype
    """
    H = hid
    G = 3 * H

    # ---- Phase 1: hoisted input projection (one wide MXU matmul, no h dep).
    gx_ref[...] = (
        jnp.dot(x_ref[...], wih_ref[...], preferred_element_type=jnp.float32)
        + bih_ref[...]
    ).astype(gx_ref.dtype)

    cdt = whh_ref.dtype  # compute dtype for MXU operands

    # ---- Phase 2: serial recurrence, both directions interleaved per step.
    def step(t, carry):
        new_carry = []
        for d in range(num_dir):
            h_prev = carry[d]
            s = t if d == 0 else seq - 1 - t              # in-kernel reversal
            row = pl.multiple_of(s * batch, batch)        # tile-aligned row
            gx_row = gx_ref[pl.ds(row, batch), :].astype(jnp.float32)
            gx = gx_row[:, d * G:(d + 1) * G]             # (batch, 3H)
            # W_hh / b_hh read inside the step: Mosaic folds the VMEM load
            # into the matmul operand fetch (avoids spills at large H).
            gh = jnp.dot(h_prev.astype(cdt), whh_ref[d],
                         preferred_element_type=jnp.float32) + bhh_ref[d]
            a = gx + gh                                    # full-width pre-act
            r = jax.nn.sigmoid(a[:, 0:H])
            z = jax.nn.sigmoid(a[:, H:2 * H])
            n = jnp.tanh(gx[:, 2 * H:3 * H] + r * gh[:, 2 * H:3 * H])
            h_new = (1.0 - z) * n + z * h_prev
            if num_dir == 1:
                out_ref[s] = h_new.astype(out_ref.dtype)
            else:
                out_ref[s, :, d * H:(d + 1) * H] = h_new.astype(out_ref.dtype)
            new_carry.append(h_new)
        return tuple(new_carry)

    h0 = tuple(jnp.zeros((batch, H), jnp.float32) for _ in range(num_dir))

    # Partial unroll (groups of up to 4 steps): gives the scheduler room to
    # overlap gx loads / output stores with the serial dot without the vreg
    # blow-up of fully unrolling long sequences.
    unroll = 4 if seq % 4 == 0 else (2 if seq % 2 == 0 else 1)
    n_outer = seq // unroll

    def outer(i, carry):
        for u in range(unroll):
            carry = step(i * unroll + u, carry)
        return carry

    lax.fori_loop(0, n_outer, outer, h0, unroll=(n_outer <= 8))


def gru_layer_pallas(x_tm, wih_cat, whh, bih_cat, bhh, *, hid, compute_dtype):
    """One GRU layer (all directions fused in a single pallas_call).

    x_tm    : (seq, batch, inp) time-major; batch already padded to sublane
              granularity by the caller.
    wih_cat : (inp, D*3H), whh: (D, H, 3H)  (compute dtype)
    bih_cat : (1, D*3H),   bhh: (D, 1, 3H)  (f32)
    returns (seq, batch, D*hid) f32 with fwd in [..., :hid], bwd in [..., hid:].
    """
    seq, batch, inp = x_tm.shape
    num_dir = whh.shape[0]
    x_flat = x_tm.reshape(seq * batch, inp).astype(compute_dtype)

    itemsize = jnp.dtype(compute_dtype).itemsize
    est = (x_flat.size * itemsize
           + wih_cat.size * itemsize + whh.size * itemsize
           + (bih_cat.size + bhh.size) * 4
           + seq * batch * num_dir * hid * 4                   # out
           + seq * batch * num_dir * 3 * hid * itemsize)       # gx scratch
    vmem_limit = int(min(max(2 * est + (4 << 20), 32 << 20), 100 << 20))

    kernel = functools.partial(_gru_layer_kernel, seq=seq, batch=batch,
                               hid=hid, num_dir=num_dir)

    return pl.pallas_call(
        kernel,
        out_shape=jax.ShapeDtypeStruct((seq, batch, num_dir * hid),
                                       jnp.float32),
        scratch_shapes=[pltpu.VMEM((seq * batch, num_dir * 3 * hid),
                                   compute_dtype)],
        compiler_params=pltpu.CompilerParams(vmem_limit_bytes=vmem_limit),
    )(x_flat, wih_cat, whh, bih_cat, bhh)


# --------------------------- Module equivalent ------------------------------
class SessionEncoderPallas:
    """JAX/Pallas equivalent of SessionEncoder (returns h_o, like forward)."""

    def __init__(self, hid_size, inp_size, num_lyr, bidi, key,
                 compute_dtype=jnp.float32):
        self.hid_size = hid_size
        self.num_lyr = num_lyr
        self.direction = 2 if bidi else 1
        self.compute_dtype = compute_dtype
        k = 1.0 / math.sqrt(hid_size)
        D, H = self.direction, hid_size
        # Weights stored pre-transposed / pre-concatenated / pre-cast ONCE:
        # params[layer] = (wih_cat (inp,D*3H), whh (D,H,3H),
        #                  bih_cat (1,D*3H),   bhh (D,1,3H))
        self.params = []
        for layer in range(num_lyr):
            layer_inp = inp_size if layer == 0 else H * D
            key, k1, k2, k3, k4 = jax.random.split(key, 5)
            wih_cat = jax.random.uniform(
                k1, (layer_inp, D * 3 * H), jnp.float32, -k, k
            ).astype(compute_dtype)
            whh = jax.random.uniform(
                k2, (D, H, 3 * H), jnp.float32, -k, k).astype(compute_dtype)
            bih_cat = jax.random.uniform(k3, (1, D * 3 * H), jnp.float32, -k, k)
            bhh = jax.random.uniform(k4, (D, 1, 3 * H), jnp.float32, -k, k)
            self.params.append((wih_cat, whh, bih_cat, bhh))

    def __call__(self, x):
        # x: (batch, seq, inp) -> h_o: (batch, seq, direction * hid)
        batch = x.shape[0]
        # Pad batch to the sublane / dtype-packing granularity so every
        # dynamic gx row slice in the kernel is tile aligned.  (Callers should
        # also pack sessions toward ~128 rows: the per-step matmul is
        # latency-bound, so extra rows are nearly free.)
        sub = 8 if jnp.dtype(self.compute_dtype).itemsize == 4 else 16
        batch_p = -(-batch // sub) * sub
        h = jnp.transpose(x, (1, 0, 2))            # time-major, once per call
        if batch_p != batch:
            h = jnp.pad(h, ((0, 0), (0, batch_p - batch), (0, 0)))
        for (wih_cat, whh, bih_cat, bhh) in self.params:
            h = gru_layer_pallas(h, wih_cat, whh, bih_cat, bhh,
                                 hid=self.hid_size,
                                 compute_dtype=self.compute_dtype)
        if batch_p != batch:
            h = h[:, :batch, :]
        return jnp.transpose(h, (1, 0, 2))
        # NOTE: nn.GRU also produces h_n, but SessionEncoder.forward returns
        # only h_o, so h_n is not materialized here.


# ---------------------------- pure-JAX reference ----------------------------
def _gru_layer_ref(x_tm, wih_t, whh_t, bih, bhh, H):
    batch = x_tm.shape[1]

    def cell(h, x_t):
        gx = x_t @ wih_t + bih
        gh = h @ whh_t + bhh
        r = jax.nn.sigmoid(gx[:, :H] + gh[:, :H])
        z = jax.nn.sigmoid(gx[:, H:2 * H] + gh[:, H:2 * H])
        n = jnp.tanh(gx[:, 2 * H:] + r * gh[:, 2 * H:])
        h_new = (1.0 - z) * n + z * h
        return h_new, h_new

    h0 = jnp.zeros((batch, H), jnp.float32)
    _, hs = lax.scan(cell, h0, x_tm)
    return hs


def _reference(model, x):
    H = model.hid_size
    G = 3 * H
    inp = jnp.transpose(x, (1, 0, 2)).astype(jnp.float32)
    for (wih_cat, whh, bih_cat, bhh) in model.params:
        wih = wih_cat.astype(jnp.float32)
        whhf = whh.astype(jnp.float32)
        outs = []
        for d in range(model.direction):
            x_d = inp if d == 0 else inp[::-1]
            hd = _gru_layer_ref(x_d, wih[:, d * G:(d + 1) * G], whhf[d],
                                bih_cat[:, d * G:(d + 1) * G], bhh[d], H)
            if d == 1:
                hd = hd[::-1]
            outs.append(hd)
        inp = outs[0] if model.direction == 1 else jnp.concatenate(outs, -1)
    return jnp.transpose(inp, (1, 0, 2))


# ---------------------------------- main ------------------------------------
if __name__ == "__main__":
    batch, seq, inp_size, hid_size = 8, 8, 32, 32

    key = jax.random.PRNGKey(0)
    key, xkey, p1, p2, p3 = jax.random.split(key, 5)
    x = jax.random.normal(xkey, (batch, seq, inp_size), jnp.float32)

    # --- Test 1: unidirectional, single layer, f32 compute (exact vs ref).
    m1 = SessionEncoderPallas(hid_size, inp_size, num_lyr=1, bidi=False, key=p1)
    h1 = jax.block_until_ready(m1(x))
    assert h1.shape == (batch, seq, hid_size)
    r1 = _reference(m1, x)
    assert jnp.allclose(h1, r1, atol=1e-5, rtol=1e-5), "uni f32 mismatch"

    # --- Test 2: bidirectional, two layers, f32 (fused-direction kernel,
    #             direct (seq, batch, 2H) output layout).
    m2 = SessionEncoderPallas(hid_size, inp_size, num_lyr=2, bidi=True, key=p2)
    h2 = jax.block_until_ready(m2(x))
    assert h2.shape == (batch, seq, 2 * hid_size)
    r2 = _reference(m2, x)
    assert jnp.allclose(h2, r2, atol=1e-5, rtol=1e-5), "bidi f32 mismatch"

    # --- Test 3: bidirectional, two layers, bf16 MXU operands + bf16 gx
    #             scratch (gate math stays f32); looser tolerance vs f32 ref.
    m3 = SessionEncoderPallas(hid_size, inp_size, num_lyr=2, bidi=True, key=p3,
                              compute_dtype=jnp.bfloat16)
    h3 = jax.block_until_ready(m3(x))
    assert h3.shape == (batch, seq, 2 * hid_size)
    r3 = _reference(m3, x)
    err = float(jnp.max(jnp.abs(h3 - r3)))
    assert err < 8e-2, f"bidi bf16 mismatch (max abs err {err})"

    print("KERNEL_OK")
</pallas_src>

<mosaic_0001>
module attributes {stable_mosaic.version = 11 : i64} {
  func.func @_gru_layer_kernel(%arg0: memref<64x32xf32, #tpu.memory_space<vmem>>, %arg1: memref<32x96xf32, #tpu.memory_space<vmem>>, %arg2: memref<1x32x96xf32, #tpu.memory_space<vmem>>, %arg3: memref<1x96xf32, #tpu.memory_space<vmem>>, %arg4: memref<1x1x96xf32, #tpu.memory_space<vmem>>, %arg5: memref<8x8x32xf32, #tpu.memory_space<vmem>>, %arg6: memref<64x96xf32, #tpu.memory_space<vmem>>) attributes {dimension_semantics = [], scalar_prefetch = 0 : i64, scratch_operands = 1 : i64, tpu.core_type = #tpu.core_type<tc>} {
    %c0 = arith.constant 0 : index
    %c0_0 = arith.constant 0 : index
    %0 = vector.load %arg0[%c0, %c0_0] : memref<64x32xf32, #tpu.memory_space<vmem>>, vector<64x32xf32>
    %c0_1 = arith.constant 0 : index
    %c0_2 = arith.constant 0 : index
    %1 = vector.load %arg1[%c0_1, %c0_2] : memref<32x96xf32, #tpu.memory_space<vmem>>, vector<32x96xf32>
    %cst = arith.constant dense<0.000000e+00> : vector<64x96xf32>
    %2 = tpu.matmul %0, %1, %cst {dimension_numbers = #tpu.dot_dimension_numbers<[1], [0], [0], [1], [0, 0, 1, 1], [], []>} : vector<64x32xf32>, vector<32x96xf32>, vector<64x96xf32> -> vector<64x96xf32>
    %c0_3 = arith.constant 0 : index
    %c0_4 = arith.constant 0 : index
    %3 = vector.load %arg3[%c0_3, %c0_4] : memref<1x96xf32, #tpu.memory_space<vmem>>, vector<1x96xf32>
    %4 = vector.broadcast %3 : vector<1x96xf32> to vector<64x96xf32>
    %5 = arith.addf %2, %4 : vector<64x96xf32>
    %c0_5 = arith.constant 0 : index
    %c0_6 = arith.constant 0 : index
    %6 = vector.load %arg6[%c0_5, %c0_6] : memref<64x96xf32, #tpu.memory_space<vmem>>, vector<64x96xf32>
    tpu.vector_store %arg6[%c0_5, %c0_6], %5 {strides = array<i32>} : memref<64x96xf32, #tpu.memory_space<vmem>>, vector<64x96xf32>,
    %cst_7 = arith.constant 0.000000e+00 : f32
    %7 = vector.broadcast %cst_7 : f32 to vector<8x32xf32>
    %c0_i32 = arith.constant 0 : i32
    %c4_i32 = arith.constant 4 : i32
    %8 = arith.muli %c0_i32, %c4_i32 : i32
    %c0_i32_8 = arith.constant 0 : i32
    %9 = arith.addi %8, %c0_i32_8 : i32
    %c8_i32 = arith.constant 8 : i32
    %10 = arith.muli %9, %c8_i32 : i32
    %11 = tpu.assume_multiple %10, 8 : i32
    %12 = arith.index_cast %11 : i32 to index
    %c0_9 = arith.constant 0 : index
    %13 = vector.load %arg6[%12, %c0_9] : memref<64x96xf32, #tpu.memory_space<vmem>>, vector<8x96xf32>
    %c0_10 = arith.constant 0 : index
    %c0_11 = arith.constant 0 : index
    %c0_12 = arith.constant 0 : index
    %14 = vector.load %arg2[%c0_10, %c0_11, %c0_12] : memref<1x32x96xf32, #tpu.memory_space<vmem>>, vector<1x32x96xf32>
    %15 = vector.shape_cast %14 : vector<1x32x96xf32> to vector<32x96xf32>
    %cst_13 = arith.constant dense<0.000000e+00> : vector<8x96xf32>
    %16 = tpu.matmul %7, %15, %cst_13 {dimension_numbers = #tpu.dot_dimension_numbers<[1], [0], [0], [1], [0, 0, 1, 1], [], []>} : vector<8x32xf32>, vector<32x96xf32>, vector<8x96xf32> -> vector<8x96xf32>
    %c0_14 = arith.constant 0 : index
    %c0_15 = arith.constant 0 : index
    %c0_16 = arith.constant 0 : index
    %17 = vector.load %arg4[%c0_14, %c0_15, %c0_16] : memref<1x1x96xf32, #tpu.memory_space<vmem>>, vector<1x1x96xf32>
    %18 = vector.shape_cast %17 : vector<1x1x96xf32> to vector<1x96xf32>
    %19 = vector.broadcast %18 : vector<1x96xf32> to vector<8x96xf32>
    %20 = arith.addf %16, %19 : vector<8x96xf32>
    %21 = arith.addf %13, %20 : vector<8x96xf32>
    %22 = vector.extract_strided_slice %21 {offsets = [0, 0], sizes = [8, 32], strides = [1, 1]} : vector<8x96xf32> to vector<8x32xf32>
    %23 = arith.negf %22 : vector<8x32xf32>
    %24 = math.exp %23 : vector<8x32xf32>
    %cst_17 = arith.constant 1.000000e+00 : f32
    %25 = vector.broadcast %cst_17 : f32 to vector<8x32xf32>
    %26 = arith.addf %25, %24 : vector<8x32xf32>
    %27 = arith.divf %25, %26 : vector<8x32xf32>
    %28 = vector.extract_strided_slice %21 {offsets = [0, 32], sizes = [8, 32], strides = [1, 1]} : vector<8x96xf32> to vector<8x32xf32>
    %29 = arith.negf %28 : vector<8x32xf32>
    %30 = math.exp %29 : vector<8x32xf32>
    %cst_18 = arith.constant 1.000000e+00 : f32
    %31 = vector.broadcast %cst_18 : f32 to vector<8x32xf32>
    %32 = arith.addf %31, %30 : vector<8x32xf32>
    %33 = arith.divf %31, %32 : vector<8x32xf32>
    %34 = vector.extract_strided_slice %13 {offsets = [0, 64], sizes = [8, 32], strides = [1, 1]} : vector<8x96xf32> to vector<8x32xf32>
    %35 = vector.extract_strided_slice %20 {offsets = [0, 64], sizes = [8, 32], strides = [1, 1]} : vector<8x96xf32> to vector<8x32xf32>
    %36 = arith.mulf %27, %35 : vector<8x32xf32>
    %37 = arith.addf %34, %36 : vector<8x32xf32>
    %38 = math.tanh %37 : vector<8x32xf32>
    %cst_19 = arith.constant 1.000000e+00 : f32
    %39 = vector.broadcast %cst_19 : f32 to vector<8x32xf32>
    %40 = arith.subf %39, %33 : vector<8x32xf32>
    %41 = arith.mulf %40, %38 : vector<8x32xf32>
    %42 = arith.mulf %33, %7 : vector<8x32xf32>
    %43 = arith.addf %41, %42 : vector<8x32xf32>
    %44 = arith.index_cast %9 : i32 to index
    %c0_20 = arith.constant 0 : index
    %c0_21 = arith.constant 0 : index
    %45 = vector.load %arg5[%44, %c0_20, %c0_21] : memref<8x8x32xf32, #tpu.memory_space<vmem>>, vector<1x8x32xf32>
    %46 = vector.shape_cast %45 : vector<1x8x32xf32> to vector<8x32xf32>
    %47 = vector.shape_cast %43 : vector<8x32xf32> to vector<1x8x32xf32>
    tpu.vector_store %arg5[%44, %c0_20, %c0_21], %47 {strides = array<i32>} : memref<8x8x32xf32, #tpu.memory_space<vmem>>, vector<1x8x32xf32>,
    %c4_i32_22 = arith.constant 4 : i32
    %48 = arith.muli %c0_i32, %c4_i32_22 : i32
    %c1_i32 = arith.constant 1 : i32
    %49 = arith.addi %48, %c1_i32 : i32
    %c8_i32_23 = arith.constant 8 : i32
    %50 = arith.muli %49, %c8_i32_23 : i32
    %51 = tpu.assume_multiple %50, 8 : i32
    %52 = arith.index_cast %51 : i32 to index
    %c0_24 = arith.constant 0 : index
    %53 = vector.load %arg6[%52, %c0_24] : memref<64x96xf32, #tpu.memory_space<vmem>>, vector<8x96xf32>
    %c0_25 = arith.constant 0 : index
    %c0_26 = arith.constant 0 : index
    %c0_27 = arith.constant 0 : index
    %54 = vector.load %arg2[%c0_25, %c0_26, %c0_27] : memref<1x32x96xf32, #tpu.memory_space<vmem>>, vector<1x32x96xf32>
    %55 = vector.shape_cast %54 : vector<1x32x96xf32> to vector<32x96xf32>
    %cst_28 = arith.constant dense<0.000000e+00> : vector<8x96xf32>
    %56 = tpu.matmul %43, %55, %cst_28 {dimension_numbers = #tpu.dot_dimension_numbers<[1], [0], [0], [1], [0, 0, 1, 1], [], []>} : vector<8x32xf32>, vector<32x96xf32>, vector<8x96xf32> -> vector<8x96xf32>
    %c0_29 = arith.constant 0 : index
    %c0_30 = arith.constant 0 : index
    %c0_31 = arith.constant 0 : index
    %57 = vector.load %arg4[%c0_29, %c0_30, %c0_31] : memref<1x1x96xf32, #tpu.memory_space<vmem>>, vector<1x1x96xf32>
    %58 = vector.shape_cast %57 : vector<1x1x96xf32> to vector<1x96xf32>
    %59 = vector.broadcast %58 : vector<1x96xf32> to vector<8x96xf32>
    %60 = arith.addf %56, %59 : vector<8x96xf32>
    %61 = arith.addf %53, %60 : vector<8x96xf32>
    %62 = vector.extract_strided_slice %61 {offsets = [0, 0], sizes = [8, 32], strides = [1, 1]} : vector<8x96xf32> to vector<8x32xf32>
    %63 = arith.negf %62 : vector<8x32xf32>
    %64 = math.exp %63 : vector<8x32xf32>
    %cst_32 = arith.constant 1.000000e+00 : f32
    %65 = vector.broadcast %cst_32 : f32 to vector<8x32xf32>
    %66 = arith.addf %65, %64 : vector<8x32xf32>
    %67 = arith.divf %65, %66 : vector<8x32xf32>
    %68 = vector.extract_strided_slice %61 {offsets = [0, 32], sizes = [8, 32], strides = [1, 1]} : vector<8x96xf32> to vector<8x32xf32>
    %69 = arith.negf %68 : vector<8x32xf32>
    %70 = math.exp %69 : vector<8x32xf32>
    %cst_33 = arith.constant 1.000000e+00 : f32
    %71 = vector.broadcast %cst_33 : f32 to vector<8x32xf32>
    %72 = arith.addf %71, %70 : vector<8x32xf32>
    %73 = arith.divf %71, %72 : vector<8x32xf32>
    %74 = vector.extract_strided_slice %53 {offsets = [0, 64], sizes = [8, 32], strides = [1, 1]} : vector<8x96xf32> to vector<8x32xf32>
    %75 = vector.extract_strided_slice %60 {offsets = [0, 64], sizes = [8, 32], strides = [1, 1]} : vector<8x96xf32> to vector<8x32xf32>
    %76 = arith.mulf %67, %75 : vector<8x32xf32>
    %77 = arith.addf %74, %76 : vector<8x32xf32>
    %78 = math.tanh %77 : vector<8x32xf32>
    %cst_34 = arith.constant 1.000000e+00 : f32
    %79 = vector.broadcast %cst_34 : f32 to vector<8x32xf32>
    %80 = arith.subf %79, %73 : vector<8x32xf32>
    %81 = arith.mulf %80, %78 : vector<8x32xf32>
    %82 = arith.mulf %73, %43 : vector<8x32xf32>
    %83 = arith.addf %81, %82 : vector<8x32xf32>
    %84 = arith.index_cast %49 : i32 to index
    %c0_35 = arith.constant 0 : index
    %c0_36 = arith.constant 0 : index
    %85 = vector.load %arg5[%84, %c0_35, %c0_36] : memref<8x8x32xf32, #tpu.memory_space<vmem>>, vector<1x8x32xf32>
    %86 = vector.shape_cast %85 : vector<1x8x32xf32> to vector<8x32xf32>
    %87 = vector.shape_cast %83 : vector<8x32xf32> to vector<1x8x32xf32>
    tpu.vector_store %arg5[%84, %c0_35, %c0_36], %87 {strides = array<i32>} : memref<8x8x32xf32, #tpu.memory_space<vmem>>, vector<1x8x32xf32>,
    %c4_i32_37 = arith.constant 4 : i32
    %88 = arith.muli %c0_i32, %c4_i32_37 : i32
    %c2_i32 = arith.constant 2 : i32
    %89 = arith.addi %88, %c2_i32 : i32
    %c8_i32_38 = arith.constant 8 : i32
    %90 = arith.muli %89, %c8_i32_38 : i32
    %91 = tpu.assume_multiple %90, 8 : i32
    %92 = arith.index_cast %91 : i32 to index
    %c0_39 = arith.constant 0 : index
    %93 = vector.load %arg6[%92, %c0_39] : memref<64x96xf32, #tpu.memory_space<vmem>>, vector<8x96xf32>
    %c0_40 = arith.constant 0 : index
    %c0_41 = arith.constant 0 : index
    %c0_42 = arith.constant 0 : index
    %94 = vector.load %arg2[%c0_40, %c0_41, %c0_42] : memref<1x32x96xf32, #tpu.memory_space<vmem>>, vector<1x32x96xf32>
    %95 = vector.shape_cast %94 : vector<1x32x96xf32> to vector<32x96xf32>
    %cst_43 = arith.constant dense<0.000000e+00> : vector<8x96xf32>
    %96 = tpu.matmul %83, %95, %cst_43 {dimension_numbers = #tpu.dot_dimension_numbers<[1], [0], [0], [1], [0, 0, 1, 1], [], []>} : vector<8x32xf32>, vector<32x96xf32>, vector<8x96xf32> -> vector<8x96xf32>
    %c0_44 = arith.constant 0 : index
    %c0_45 = arith.constant 0 : index
    %c0_46 = arith.constant 0 : index
    %97 = vector.load %arg4[%c0_44, %c0_45, %c0_46] : memref<1x1x96xf32, #tpu.memory_space<vmem>>, vector<1x1x96xf32>
    %98 = vector.shape_cast %97 : vector<1x1x96xf32> to vector<1x96xf32>
    %99 = vector.broadcast %98 : vector<1x96xf32> to vector<8x96xf32>
    %100 = arith.addf %96, %99 : vector<8x96xf32>
    %101 = arith.addf %93, %100 : vector<8x96xf32>
    %102 = vector.extract_strided_slice %101 {offsets = [0, 0], sizes = [8, 32], strides = [1, 1]} : vector<8x96xf32> to vector<8x32xf32>
    %103 = arith.negf %102 : vector<8x32xf32>
    %104 = math.exp %103 : vector<8x32xf32>
    %cst_47 = arith.constant 1.000000e+00 : f32
    %105 = vector.broadcast %cst_47 : f32 to vector<8x32xf32>
    %106 = arith.addf %105, %104 : vector<8x32xf32>
    %107 = arith.divf %105, %106 : vector<8x32xf32>
    %108 = vector.extract_strided_slice %101 {offsets = [0, 32], sizes = [8, 32], strides = [1, 1]} : vector<8x96xf32> to vector<8x32xf32>
    %109 = arith.negf %108 : vector<8x32xf32>
    %110 = math.exp %109 : vector<8x32xf32>
    %cst_48 = arith.constant 1.000000e+00 : f32
    %111 = vector.broadcast %cst_48 : f32 to vector<8x32xf32>
    %112 = arith.addf %111, %110 : vector<8x32xf32>
    %113 = arith.divf %111, %112 : vector<8x32xf32>
    %114 = vector.extract_strided_slice %93 {offsets = [0, 64], sizes = [8, 32], strides = [1, 1]} : vector<8x96xf32> to vector<8x32xf32>
    %115 = vector.extract_strided_slice %100 {offsets = [0, 64], sizes = [8, 32], strides = [1, 1]} : vector<8x96xf32> to vector<8x32xf32>
    %116 = arith.mulf %107, %115 : vector<8x32xf32>
    %117 = arith.addf %114, %116 : vector<8x32xf32>
    %118 = math.tanh %117 : vector<8x32xf32>
    %cst_49 = arith.constant 1.000000e+00 : f32
    %119 = vector.broadcast %cst_49 : f32 to vector<8x32xf32>
    %120 = arith.subf %119, %113 : vector<8x32xf32>
    %121 = arith.mulf %120, %118 : vector<8x32xf32>
    %122 = arith.mulf %113, %83 : vector<8x32xf32>
    %123 = arith.addf %121, %122 : vector<8x32xf32>
    %124 = arith.index_cast %89 : i32 to index
    %c0_50 = arith.constant 0 : index
    %c0_51 = arith.constant 0 : index
    %125 = vector.load %arg5[%124, %c0_50, %c0_51] : memref<8x8x32xf32, #tpu.memory_space<vmem>>, vector<1x8x32xf32>
    %126 = vector.shape_cast %125 : vector<1x8x32xf32> to vector<8x32xf32>
    %127 = vector.shape_cast %123 : vector<8x32xf32> to vector<1x8x32xf32>
    tpu.vector_store %arg5[%124, %c0_50, %c0_51], %127 {strides = array<i32>} : memref<8x8x32xf32, #tpu.memory_space<vmem>>, vector<1x8x32xf32>,
    %c4_i32_52 = arith.constant 4 : i32
    %128 = arith.muli %c0_i32, %c4_i32_52 : i32
    %c3_i32 = arith.constant 3 : i32
    %129 = arith.addi %128, %c3_i32 : i32
    %c8_i32_53 = arith.constant 8 : i32
    %130 = arith.muli %129, %c8_i32_53 : i32
    %131 = tpu.assume_multiple %130, 8 : i32
    %132 = arith.index_cast %131 : i32 to index
    %c0_54 = arith.constant 0 : index
    %133 = vector.load %arg6[%132, %c0_54] : memref<64x96xf32, #tpu.memory_space<vmem>>, vector<8x96xf32>
    %c0_55 = arith.constant 0 : index
    %c0_56 = arith.constant 0 : index
    %c0_57 = arith.constant 0 : index
    %134 = vector.load %arg2[%c0_55, %c0_56, %c0_57] : memref<1x32x96xf32, #tpu.memory_space<vmem>>, vector<1x32x96xf32>
    %135 = vector.shape_cast %134 : vector<1x32x96xf32> to vector<32x96xf32>
    %cst_58 = arith.constant dense<0.000000e+00> : vector<8x96xf32>
    %136 = tpu.matmul %123, %135, %cst_58 {dimension_numbers = #tpu.dot_dimension_numbers<[1], [0], [0], [1], [0, 0, 1, 1], [], []>} : vector<8x32xf32>, vector<32x96xf32>, vector<8x96xf32> -> vector<8x96xf32>
    %c0_59 = arith.constant 0 : index
    %c0_60 = arith.constant 0 : index
    %c0_61 = arith.constant 0 : index
    %137 = vector.load %arg4[%c0_59, %c0_60, %c0_61] : memref<1x1x96xf32, #tpu.memory_space<vmem>>, vector<1x1x96xf32>
    %138 = vector.shape_cast %137 : vector<1x1x96xf32> to vector<1x96xf32>
    %139 = vector.broadcast %138 : vector<1x96xf32> to vector<8x96xf32>
    %140 = arith.addf %136, %139 : vector<8x96xf32>
    %141 = arith.addf %133, %140 : vector<8x96xf32>
    %142 = vector.extract_strided_slice %141 {offsets = [0, 0], sizes = [8, 32], strides = [1, 1]} : vector<8x96xf32> to vector<8x32xf32>
    %143 = arith.negf %142 : vector<8x32xf32>
    %144 = math.exp %143 : vector<8x32xf32>
    %cst_62 = arith.constant 1.000000e+00 : f32
    %145 = vector.broadcast %cst_62 : f32 to vector<8x32xf32>
    %146 = arith.addf %145, %144 : vector<8x32xf32>
    %147 = arith.divf %145, %146 : vector<8x32xf32>
    %148 = vector.extract_strided_slice %141 {offsets = [0, 32], sizes = [8, 32], strides = [1, 1]} : vector<8x96xf32> to vector<8x32xf32>
    %149 = arith.negf %148 : vector<8x32xf32>
    %150 = math.exp %149 : vector<8x32xf32>
    %cst_63 = arith.constant 1.000000e+00 : f32
    %151 = vector.broadcast %cst_63 : f32 to vector<8x32xf32>
    %152 = arith.addf %151, %150 : vector<8x32xf32>
    %153 = arith.divf %151, %152 : vector<8x32xf32>
    %154 = vector.extract_strided_slice %133 {offsets = [0, 64], sizes = [8, 32], strides = [1, 1]} : vector<8x96xf32> to vector<8x32xf32>
    %155 = vector.extract_strided_slice %140 {offsets = [0, 64], sizes = [8, 32], strides = [1, 1]} : vector<8x96xf32> to vector<8x32xf32>
    %156 = arith.mulf %147, %155 : vector<8x32xf32>
    %157 = arith.addf %154, %156 : vector<8x32xf32>
    %158 = math.tanh %157 : vector<8x32xf32>
    %cst_64 = arith.constant 1.000000e+00 : f32
    %159 = vector.broadcast %cst_64 : f32 to vector<8x32xf32>
    %160 = arith.subf %159, %153 : vector<8x32xf32>
    %161 = arith.mulf %160, %158 : vector<8x32xf32>
    %162 = arith.mulf %153, %123 : vector<8x32xf32>
    %163 = arith.addf %161, %162 : vector<8x32xf32>
    %164 = arith.index_cast %129 : i32 to index
    %c0_65 = arith.constant 0 : index
    %c0_66 = arith.constant 0 : index
    %165 = vector.load %arg5[%164, %c0_65, %c0_66] : memref<8x8x32xf32, #tpu.memory_space<vmem>>, vector<1x8x32xf32>
    %166 = vector.shape_cast %165 : vector<1x8x32xf32> to vector<8x32xf32>
    %167 = vector.shape_cast %163 : vector<8x32xf32> to vector<1x8x32xf32>
    tpu.vector_store %arg5[%164, %c0_65, %c0_66], %167 {strides = array<i32>} : memref<8x8x32xf32, #tpu.memory_space<vmem>>, vector<1x8x32xf32>,
    %c1_i32_67 = arith.constant 1 : i32
    %c4_i32_68 = arith.constant 4 : i32
    %168 = arith.muli %c1_i32_67, %c4_i32_68 : i32
    %c0_i32_69 = arith.constant 0 : i32
    %169 = arith.addi %168, %c0_i32_69 : i32
    %c8_i32_70 = arith.constant 8 : i32
    %170 = arith.muli %169, %c8_i32_70 : i32
    %171 = tpu.assume_multiple %170, 8 : i32
    %172 = arith.index_cast %171 : i32 to index
    %c0_71 = arith.constant 0 : index
    %173 = vector.load %arg6[%172, %c0_71] : memref<64x96xf32, #tpu.memory_space<vmem>>, vector<8x96xf32>
    %c0_72 = arith.constant 0 : index
    %c0_73 = arith.constant 0 : index
    %c0_74 = arith.constant 0 : index
    %174 = vector.load %arg2[%c0_72, %c0_73, %c0_74] : memref<1x32x96xf32, #tpu.memory_space<vmem>>, vector<1x32x96xf32>
    %175 = vector.shape_cast %174 : vector<1x32x96xf32> to vector<32x96xf32>
    %cst_75 = arith.constant dense<0.000000e+00> : vector<8x96xf32>
    %176 = tpu.matmul %163, %175, %cst_75 {dimension_numbers = #tpu.dot_dimension_numbers<[1], [0], [0], [1], [0, 0, 1, 1], [], []>} : vector<8x32xf32>, vector<32x96xf32>, vector<8x96xf32> -> vector<8x96xf32>
    %c0_76 = arith.constant 0 : index
    %c0_77 = arith.constant 0 : index
    %c0_78 = arith.constant 0 : index
    %177 = vector.load %arg4[%c0_76, %c0_77, %c0_78] : memref<1x1x96xf32, #tpu.memory_space<vmem>>, vector<1x1x96xf32>
    %178 = vector.shape_cast %177 : vector<1x1x96xf32> to vector<1x96xf32>
    %179 = vector.broadcast %178 : vector<1x96xf32> to vector<8x96xf32>
    %180 = arith.addf %176, %179 : vector<8x96xf32>
    %181 = arith.addf %173, %180 : vector<8x96xf32>
    %182 = vector.extract_strided_slice %181 {offsets = [0, 0], sizes = [8, 32], strides = [1, 1]} : vector<8x96xf32> to vector<8x32xf32>
    %183 = arith.negf %182 : vector<8x32xf32>
    %184 = math.exp %183 : vector<8x32xf32>
    %cst_79 = arith.constant 1.000000e+00 : f32
    %185 = vector.broadcast %cst_79 : f32 to vector<8x32xf32>
    %186 = arith.addf %185, %184 : vector<8x32xf32>
    %187 = arith.divf %185, %186 : vector<8x32xf32>
    %188 = vector.extract_strided_slice %181 {offsets = [0, 32], sizes = [8, 32], strides = [1, 1]} : vector<8x96xf32> to vector<8x32xf32>
    %189 = arith.negf %188 : vector<8x32xf32>
    %190 = math.exp %189 : vector<8x32xf32>
    %cst_80 = arith.constant 1.000000e+00 : f32
    %191 = vector.broadcast %cst_80 : f32 to vector<8x32xf32>
    %192 = arith.addf %191, %190 : vector<8x32xf32>
    %193 = arith.divf %191, %192 : vector<8x32xf32>
    %194 = vector.extract_strided_slice %173 {offsets = [0, 64], sizes = [8, 32], strides = [1, 1]} : vector<8x96xf32> to vector<8x32xf32>
    %195 = vector.extract_strided_slice %180 {offsets = [0, 64], sizes = [8, 32], strides = [1, 1]} : vector<8x96xf32> to vector<8x32xf32>
    %196 = arith.mulf %187, %195 : vector<8x32xf32>
    %197 = arith.addf %194, %196 : vector<8x32xf32>
    %198 = math.tanh %197 : vector<8x32xf32>
    %cst_81 = arith.constant 1.000000e+00 : f32
    %199 = vector.broadcast %cst_81 : f32 to vector<8x32xf32>
    %200 = arith.subf %199, %193 : vector<8x32xf32>
    %201 = arith.mulf %200, %198 : vector<8x32xf32>
    %202 = arith.mulf %193, %163 : vector<8x32xf32>
    %203 = arith.addf %201, %202 : vector<8x32xf32>
    %204 = arith.index_cast %169 : i32 to index
    %c0_82 = arith.constant 0 : index
    %c0_83 = arith.constant 0 : index
    %205 = vector.load %arg5[%204, %c0_82, %c0_83] : memref<8x8x32xf32, #tpu.memory_space<vmem>>, vector<1x8x32xf32>
    %206 = vector.shape_cast %205 : vector<1x8x32xf32> to vector<8x32xf32>
    %207 = vector.shape_cast %203 : vector<8x32xf32> to vector<1x8x32xf32>
    tpu.vector_store %arg5[%204, %c0_82, %c0_83], %207 {strides = array<i32>} : memref<8x8x32xf32, #tpu.memory_space<vmem>>, vector<1x8x32xf32>,
    %c4_i32_84 = arith.constant 4 : i32
    %208 = arith.muli %c1_i32_67, %c4_i32_84 : i32
    %c1_i32_85 = arith.constant 1 : i32
    %209 = arith.addi %208, %c1_i32_85 : i32
    %c8_i32_86 = arith.constant 8 : i32
    %210 = arith.muli %209, %c8_i32_86 : i32
    %211 = tpu.assume_multiple %210, 8 : i32
    %212 = arith.index_cast %211 : i32 to index
    %c0_87 = arith.constant 0 : index
    %213 = vector.load %arg6[%212, %c0_87] : memref<64x96xf32, #tpu.memory_space<vmem>>, vector<8x96xf32>
    %c0_88 = arith.constant 0 : index
    %c0_89 = arith.constant 0 : index
    %c0_90 = arith.constant 0 : index
    %214 = vector.load %arg2[%c0_88, %c0_89, %c0_90] : memref<1x32x96xf32, #tpu.memory_space<vmem>>, vector<1x32x96xf32>
    %215 = vector.shape_cast %214 : vector<1x32x96xf32> to vector<32x96xf32>
    %cst_91 = arith.constant dense<0.000000e+00> : vector<8x96xf32>
    %216 = tpu.matmul %203, %215, %cst_91 {dimension_numbers = #tpu.dot_dimension_numbers<[1], [0], [0], [1], [0, 0, 1, 1], [], []>} : vector<8x32xf32>, vector<32x96xf32>, vector<8x96xf32> -> vector<8x96xf32>
    %c0_92 = arith.constant 0 : index
    %c0_93 = arith.constant 0 : index
    %c0_94 = arith.constant 0 : index
    %217 = vector.load %arg4[%c0_92, %c0_93, %c0_94] : memref<1x1x96xf32, #tpu.memory_space<vmem>>, vector<1x1x96xf32>
    %218 = vector.shape_cast %217 : vector<1x1x96xf32> to vector<1x96xf32>
    %219 = vector.broadcast %218 : vector<1x96xf32> to vector<8x96xf32>
    %220 = arith.addf %216, %219 : vector<8x96xf32>
    %221 = arith.addf %213, %220 : vector<8x96xf32>
    %222 = vector.extract_strided_slice %221 {offsets = [0, 0], sizes = [8, 32], strides = [1, 1]} : vector<8x96xf32> to vector<8x32xf32>
    %223 = arith.negf %222 : vector<8x32xf32>
    %224 = math.exp %223 : vector<8x32xf32>
    %cst_95 = arith.constant 1.000000e+00 : f32
    %225 = vector.broadcast %cst_95 : f32 to vector<8x32xf32>
    %226 = arith.addf %225, %224 : vector<8x32xf32>
    %227 = arith.divf %225, %226 : vector<8x32xf32>
    %228 = vector.extract_strided_slice %221 {offsets = [0, 32], sizes = [8, 32], strides = [1, 1]} : vector<8x96xf32> to vector<8x32xf32>
    %229 = arith.negf %228 : vector<8x32xf32>
    %230 = math.exp %229 : vector<8x32xf32>
    %cst_96 = arith.constant 1.000000e+00 : f32
    %231 = vector.broadcast %cst_96 : f32 to vector<8x32xf32>
    %232 = arith.addf %231, %230 : vector<8x32xf32>
    %233 = arith.divf %231, %232 : vector<8x32xf32>
    %234 = vector.extract_strided_slice %213 {offsets = [0, 64], sizes = [8, 32], strides = [1, 1]} : vector<8x96xf32> to vector<8x32xf32>
    %235 = vector.extract_strided_slice %220 {offsets = [0, 64], sizes = [8, 32], strides = [1, 1]} : vector<8x96xf32> to vector<8x32xf32>
    %236 = arith.mulf %227, %235 : vector<8x32xf32>
    %237 = arith.addf %234, %236 : vector<8x32xf32>
    %238 = math.tanh %237 : vector<8x32xf32>
    %cst_97 = arith.constant 1.000000e+00 : f32
    %239 = vector.broadcast %cst_97 : f32 to vector<8x32xf32>
    %240 = arith.subf %239, %233 : vector<8x32xf32>
    %241 = arith.mulf %240, %238 : vector<8x32xf32>
    %242 = arith.mulf %233, %203 : vector<8x32xf32>
    %243 = arith.addf %241, %242 : vector<8x32xf32>
    %244 = arith.index_cast %209 : i32 to index
    %c0_98 = arith.constant 0 : index
    %c0_99 = arith.constant 0 : index
    %245 = vector.load %arg5[%244, %c0_98, %c0_99] : memref<8x8x32xf32, #tpu.memory_space<vmem>>, vector<1x8x32xf32>
    %246 = vector.shape_cast %245 : vector<1x8x32xf32> to vector<8x32xf32>
    %247 = vector.shape_cast %243 : vector<8x32xf32> to vector<1x8x32xf32>
    tpu.vector_store %arg5[%244, %c0_98, %c0_99], %247 {strides = array<i32>} : memref<8x8x32xf32, #tpu.memory_space<vmem>>, vector<1x8x32xf32>,
    %c4_i32_100 = arith.constant 4 : i32
    %248 = arith.muli %c1_i32_67, %c4_i32_100 : i32
    %c2_i32_101 = arith.constant 2 : i32
    %249 = arith.addi %248, %c2_i32_101 : i32
    %c8_i32_102 = arith.constant 8 : i32
    %250 = arith.muli %249, %c8_i32_102 : i32
    %251 = tpu.assume_multiple %250, 8 : i32
    %252 = arith.index_cast %251 : i32 to index
    %c0_103 = arith.constant 0 : index
    %253 = vector.load %arg6[%252, %c0_103] : memref<64x96xf32, #tpu.memory_space<vmem>>, vector<8x96xf32>
    %c0_104 = arith.constant 0 : index
    %c0_105 = arith.constant 0 : index
    %c0_106 = arith.constant 0 : index
    %254 = vector.load %arg2[%c0_104, %c0_105, %c0_106] : memref<1x32x96xf32, #tpu.memory_space<vmem>>, vector<1x32x96xf32>
    %255 = vector.shape_cast %254 : vector<1x32x96xf32> to vector<32x96xf32>
    %cst_107 = arith.constant dense<0.000000e+00> : vector<8x96xf32>
    %256 = tpu.matmul %243, %255, %cst_107 {dimension_numbers = #tpu.dot_dimension_numbers<[1], [0], [0], [1], [0, 0, 1, 1], [], []>} : vector<8x32xf32>, vector<32x96xf32>, vector<8x96xf32> -> vector<8x96xf32>
    %c0_108 = arith.constant 0 : index
    %c0_109 = arith.constant 0 : index
    %c0_110 = arith.constant 0 : index
    %257 = vector.load %arg4[%c0_108, %c0_109, %c0_110] : memref<1x1x96xf32, #tpu.memory_space<vmem>>, vector<1x1x96xf32>
    %258 = vector.shape_cast %257 : vector<1x1x96xf32> to vector<1x96xf32>
    %259 = vector.broadcast %258 : vector<1x96xf32> to vector<8x96xf32>
    %260 = arith.addf %256, %259 : vector<8x96xf32>
    %261 = arith.addf %253, %260 : vector<8x96xf32>
    %262 = vector.extract_strided_slice %261 {offsets = [0, 0], sizes = [8, 32], strides = [1, 1]} : vector<8x96xf32> to vector<8x32xf32>
    %263 = arith.negf %262 : vector<8x32xf32>
    %264 = math.exp %263 : vector<8x32xf32>
    %cst_111 = arith.constant 1.000000e+00 : f32
    %265 = vector.broadcast %cst_111 : f32 to vector<8x32xf32>
    %266 = arith.addf %265, %264 : vector<8x32xf32>
    %267 = arith.divf %265, %266 : vector<8x32xf32>
    %268 = vector.extract_strided_slice %261 {offsets = [0, 32], sizes = [8, 32], strides = [1, 1]} : vector<8x96xf32> to vector<8x32xf32>
    %269 = arith.negf %268 : vector<8x32xf32>
    %270 = math.exp %269 : vector<8x32xf32>
    %cst_112 = arith.constant 1.000000e+00 : f32
    %271 = vector.broadcast %cst_112 : f32 to vector<8x32xf32>
    %272 = arith.addf %271, %270 : vector<8x32xf32>
    %273 = arith.divf %271, %272 : vector<8x32xf32>
    %274 = vector.extract_strided_slice %253 {offsets = [0, 64], sizes = [8, 32], strides = [1, 1]} : vector<8x96xf32> to vector<8x32xf32>
    %275 = vector.extract_strided_slice %260 {offsets = [0, 64], sizes = [8, 32], strides = [1, 1]} : vector<8x96xf32> to vector<8x32xf32>
    %276 = arith.mulf %267, %275 : vector<8x32xf32>
    %277 = arith.addf %274, %276 : vector<8x32xf32>
    %278 = math.tanh %277 : vector<8x32xf32>
    %cst_113 = arith.constant 1.000000e+00 : f32
    %279 = vector.broadcast %cst_113 : f32 to vector<8x32xf32>
    %280 = arith.subf %279, %273 : vector<8x32xf32>
    %281 = arith.mulf %280, %278 : vector<8x32xf32>
    %282 = arith.mulf %273, %243 : vector<8x32xf32>
    %283 = arith.addf %281, %282 : vector<8x32xf32>
    %284 = arith.index_cast %249 : i32 to index
    %c0_114 = arith.constant 0 : index
    %c0_115 = arith.constant 0 : index
    %285 = vector.load %arg5[%284, %c0_114, %c0_115] : memref<8x8x32xf32, #tpu.memory_space<vmem>>, vector<1x8x32xf32>
    %286 = vector.shape_cast %285 : vector<1x8x32xf32> to vector<8x32xf32>
    %287 = vector.shape_cast %283 : vector<8x32xf32> to vector<1x8x32xf32>
    tpu.vector_store %arg5[%284, %c0_114, %c0_115], %287 {strides = array<i32>} : memref<8x8x32xf32, #tpu.memory_space<vmem>>, vector<1x8x32xf32>,
    %c4_i32_116 = arith.constant 4 : i32
    %288 = arith.muli %c1_i32_67, %c4_i32_116 : i32
    %c3_i32_117 = arith.constant 3 : i32
    %289 = arith.addi %288, %c3_i32_117 : i32
    %c8_i32_118 = arith.constant 8 : i32
    %290 = arith.muli %289, %c8_i32_118 : i32
    %291 = tpu.assume_multiple %290, 8 : i32
    %292 = arith.index_cast %291 : i32 to index
    %c0_119 = arith.constant 0 : index
    %293 = vector.load %arg6[%292, %c0_119] : memref<64x96xf32, #tpu.memory_space<vmem>>, vector<8x96xf32>
    %c0_120 = arith.constant 0 : index
    %c0_121 = arith.constant 0 : index
    %c0_122 = arith.constant 0 : index
    %294 = vector.load %arg2[%c0_120, %c0_121, %c0_122] : memref<1x32x96xf32, #tpu.memory_space<vmem>>, vector<1x32x96xf32>
    %295 = vector.shape_cast %294 : vector<1x32x96xf32> to vector<32x96xf32>
    %cst_123 = arith.constant dense<0.000000e+00> : vector<8x96xf32>
    %296 = tpu.matmul %283, %295, %cst_123 {dimension_numbers = #tpu.dot_dimension_numbers<[1], [0], [0], [1], [0, 0, 1, 1], [], []>} : vector<8x32xf32>, vector<32x96xf32>, vector<8x96xf32> -> vector<8x96xf32>
    %c0_124 = arith.constant 0 : index
    %c0_125 = arith.constant 0 : index
    %c0_126 = arith.constant 0 : index
    %297 = vector.load %arg4[%c0_124, %c0_125, %c0_126] : memref<1x1x96xf32, #tpu.memory_space<vmem>>, vector<1x1x96xf32>
    %298 = vector.shape_cast %297 : vector<1x1x96xf32> to vector<1x96xf32>
    %299 = vector.broadcast %298 : vector<1x96xf32> to vector<8x96xf32>
    %300 = arith.addf %296, %299 : vector<8x96xf32>
    %301 = arith.addf %293, %300 : vector<8x96xf32>
    %302 = vector.extract_strided_slice %301 {offsets = [0, 0], sizes = [8, 32], strides = [1, 1]} : vector<8x96xf32> to vector<8x32xf32>
    %303 = arith.negf %302 : vector<8x32xf32>
    %304 = math.exp %303 : vector<8x32xf32>
    %cst_127 = arith.constant 1.000000e+00 : f32
    %305 = vector.broadcast %cst_127 : f32 to vector<8x32xf32>
    %306 = arith.addf %305, %304 : vector<8x32xf32>
    %307 = arith.divf %305, %306 : vector<8x32xf32>
    %308 = vector.extract_strided_slice %301 {offsets = [0, 32], sizes = [8, 32], strides = [1, 1]} : vector<8x96xf32> to vector<8x32xf32>
    %309 = arith.negf %308 : vector<8x32xf32>
    %310 = math.exp %309 : vector<8x32xf32>
    %cst_128 = arith.constant 1.000000e+00 : f32
    %311 = vector.broadcast %cst_128 : f32 to vector<8x32xf32>
    %312 = arith.addf %311, %310 : vector<8x32xf32>
    %313 = arith.divf %311, %312 : vector<8x32xf32>
    %314 = vector.extract_strided_slice %293 {offsets = [0, 64], sizes = [8, 32], strides = [1, 1]} : vector<8x96xf32> to vector<8x32xf32>
    %315 = vector.extract_strided_slice %300 {offsets = [0, 64], sizes = [8, 32], strides = [1, 1]} : vector<8x96xf32> to vector<8x32xf32>
    %316 = arith.mulf %307, %315 : vector<8x32xf32>
    %317 = arith.addf %314, %316 : vector<8x32xf32>
    %318 = math.tanh %317 : vector<8x32xf32>
    %cst_129 = arith.constant 1.000000e+00 : f32
    %319 = vector.broadcast %cst_129 : f32 to vector<8x32xf32>
    %320 = arith.subf %319, %313 : vector<8x32xf32>
    %321 = arith.mulf %320, %318 : vector<8x32xf32>
    %322 = arith.mulf %313, %283 : vector<8x32xf32>
    %323 = arith.addf %321, %322 : vector<8x32xf32>
    %324 = arith.index_cast %289 : i32 to index
    %c0_130 = arith.constant 0 : index
    %c0_131 = arith.constant 0 : index
    %325 = vector.load %arg5[%324, %c0_130, %c0_131] : memref<8x8x32xf32, #tpu.memory_space<vmem>>, vector<1x8x32xf32>
    %326 = vector.shape_cast %325 : vector<1x8x32xf32> to vector<8x32xf32>
    %327 = vector.shape_cast %323 : vector<8x32xf32> to vector<1x8x32xf32>
    tpu.vector_store %arg5[%324, %c0_130, %c0_131], %327 {strides = array<i32>} : memref<8x8x32xf32, #tpu.memory_space<vmem>>, vector<1x8x32xf32>,
    %c2_i32_132 = arith.constant 2 : i32
    return
  }
}

</mosaic_0001>

<bundles_post_ra>
// kernel: tpu_custom_call.1
= control target key start
LH: loop header
LB: loop body
LE: loop exit
PB: predicated region body
PF: predicated region fallthrough
CT: control target
= control target key end

     0   :  { %v1458_v3 = vmov 0.0|0.0   ;;  %vm1459_vm0 = vmmov 0   ;;  %v1460_v8 = vmov 0.0   ;;  %vm40_vm1 = vcmask 261120   ;;  %s1698_s0 = inlined_call_operand.vmem [shape: f32[64,32], index: 0, kind: input, shape index: {}]   ;;  %s1699_s1 = inlined_call_operand.vmem [shape: f32[32,96], index: 1, kind: input, shape index: {}]   ;;  %s1700_s2 = inlined_call_operand.vmem [shape: f32[1,32,96], index: 2, kind: input, shape index: {}]   ;;  %s1701_s3 = inlined_call_operand.vmem [shape: f32[1,96], index: 3, kind: input, shape index: {}]   ;;  %s1702_s4 = inlined_call_operand.vmem [shape: f32[1,1,96], index: 4, kind: input, shape index: {}]   ;;  %s1703_s5 = inlined_call_operand.hbm [shape: f32[8,8,32], index: 5, kind: output, shape index: {}]  }
   0x1   :  { %v29_v0 = vld [vmem:[%s1699_s1] sm:$0xff]  ;;  %v30_v1 = vld [vmem:[%s1699_s1 + $0x8] sm:$0xff]  ;;  %1330 = vmatprep.subr.bf16.mxu1 %v1458_v3  ;;  %v31_v6 = vld [vmem:[%s1699_s1 + $0x10] sm:$0xff]  ;;  %1242 = vmatprep.mubr.msk.f32.mxu1 %vm1459_vm0, %v1460_v8 }
   0x2   :  { %v180_v2 = vld [vmem:[%s1700_s2] sm:$0xff]  ;;  %v1322_v4 = vpack.c.bf16 %v30_v1, %v29_v0  ;;  %v181_v5 = vld [vmem:[%s1700_s2 + $0x8] sm:$0xff]  ;;  %v32_v7 = vld [vmem:[%s1699_s1 + $0x18] sm:$0xff] }
   0x3   :  { %v1517_v9 = vpack.c.bf16 %v181_v5, %v180_v2  ;;  %v1326_v10 = vpack.c.bf16 %v32_v7, %v31_v6  ;;  %v182_v11 = vld [vmem:[%s1700_s2 + $0x10] sm:$0xff]  ;;  %v183_v12 = vld [vmem:[%s1700_s2 + $0x18] sm:$0xff]  ;;  %v21_v13 = vld [vmem:[%s1698_s0] sm:$0xff] }
   0x4   :  { %1323 = vmatprep.subr.bf16.mxu0 %v1322_v4  ;;  %1222 = vmatprep.mubr.msk.f32.mxu0 %vm40_vm1, %v21_v13 }
   0x5   :  { %10 = vsyncpa [#allocation4], 0  ;;  %1332 = vmatpush3.bf16.msra.mxu1 %v1517_v9  ;;  %1325 = vmatpush3.bf16.msra.mxu0 %v1322_v4  ;;  %v1530_v14 = vpack.c.bf16 %v183_v12, %v182_v11  ;;  %v22_v15 = vld [vmem:[%s1698_s0 + $0x8] sm:$0xff]  ;;  %v1554_v16 = vld [vmem:[%s1702_s4] ss:$0 sm:$0xff]  ;;  %vm170_vm2 = vcmask 785408  }
   0x6   :  { %1333 = vmatprep.subr.bf16.mxu1 %v1458_v3  ;;  %1327 = vmatprep.subr.bf16.mxu0 %v1326_v10  ;;  %v1559_v17 = vld [vmem:[%s1701_s3] ss:$0 sm:$0xff]  ;;  %s1461_s4 = smov 64   ;;  %s1462_s3 = smov 96   ;;  %v23_v55 = vld [vmem:[%s1698_s0 + $0x10] sm:$0xff]  ;;  %v24_v56 = vld [vmem:[%s1698_s0 + $0x18] sm:$0xff] }
   0x7   :  { %v25_v57 = vld [vmem:[%s1698_s0 + $0x20] sm:$0xff]  ;;  %v26_v58 = vld [vmem:[%s1698_s0 + $0x28] sm:$0xff]  ;;  %v27_v59 = vld [vmem:[%s1698_s0 + $0x30] sm:$0xff] }
   0x8   :  { %v28_v60 = vld [vmem:[%s1698_s0 + $0x38] sm:$0xff]  ;;  %s1463_s0 = smov [#allocation3]  }
   0x9   :  { %1335 = vmatpush3.bf16.msra.mxu1 %v1530_v14  ;;  %1329 = vmatpush3.bf16.msra.mxu0 %v1326_v10  ;;  %s1119_s27 = sshll.u32 %s1463_s0, 4  ;;  %s1120_s27 = int_to_ptr.vmem [resolvable:$true] %s1119_s27 }
   0xa   :  { %1336 = vmatprep.subr.bf16.mxu1 %v1458_v3  ;;  %1342 = vmatprep.subr.bf16.mxu0 %v1458_v3  ;;  %s1434_s28 = scalar_lea.vmem %s1120_s27, 1024  ;;  %p1439_p1 = scmp.lt.s32.totalorder %s1120_s27, %s1120_s27 }
   0xb   :  { %p1435_p0 = scmp.ne.s32.totalorder %s1120_s27, %s1434_s28  ;;  %p1440_p2 = scmp.lt.s32.totalorder %s1434_s28, %s1434_s28 }
   0xc   :  { %1243 = vmatmul.mubr.f32.vlgmr.msra.gmra.mrb[0].mxu1 %v1460_v8  ;;  %1223 = vmatmul.mubr.msk.f32.vlgmr.msra.gmra.mrb[0].mxu0 %vm40_vm1, %v22_v15 }
   0xd   :  { %1338 = vmatpush3.bf16.msra.mxu1 %v1517_v9  ;;  %1253 = vmatprep.mubr.msk.f32.mxu1 %vm1459_vm0, %v1460_v8  ;;  %p1441_p3 = por %p1440_p2, %p1439_p1 }
   0xe   :  { %1339 = vmatprep.subr.bf16.mxu1 %v1458_v3  ;;  %1344 = vmatpush3.bf16.msra.mxu0 %v1517_v9 }
   0xf   :  { %1345 = vmatprep.subr.bf16.mxu0 %v1458_v3  ;;  %1225 = vmatprep.mubr.msk.f32.mxu0 %vm40_vm1, %v23_v55  ;;  %p1442_p4 = pnand %p1441_p3, %p1435_p0 }
  0x10   :  { %1226 = vmatmul.mubr.msk.f32.gmra.mrb[2].mxu0 %vm40_vm1, %v24_v56 }
  0x11   :  { %1341 = vmatpush3.bf16.msra.mxu1 %v1530_v14  ;;  %1228 = vmatprep.mubr.msk.f32.mxu0 %vm40_vm1, %v25_v57 }
  0x12   :  { %1347 = vmatpush3.bf16.msra.mxu0 %v1530_v14  ;;  %1348 = vmatprep.subr.bf16.mxu1 %v1458_v3 }
  0x13   :  { %1354 = vmatprep.subr.bf16.mxu0 %v1458_v3 }
  0x14   :  { %1229 = vmatmul.mubr.msk.f32.gmra.mrb[4].mxu0 %vm40_vm1, %v26_v58 }
  0x15   :  { %1231 = vmatprep.mubr.msk.f32.mxu0 %vm40_vm1, %v27_v59 }
  0x18   :  { %1232 = vmatmul.mubr.msk.f32.gmra.mrb[6].mxu0 %vm40_vm1, %v28_v60 }
  0x19   :  { %1264 = vmatprep.mubr.msk.f32.mxu0 %vm1459_vm0, %v1460_v8 }
  0xdf   :  { %v260_v18 = vpop.f32.mrb[0].mxu1  ;;  %v1224_v19 = vpop.f32.mrb[0].mxu0 }
  0xe0   :  { %v261_v20 = vadd.f32 %v1554_v16, %v260_v18  ;;  %v137_v21 = vadd.f32 %v1224_v19, %v1559_v17  ;;  %v1244_v22 = vpop.f32.mrb[1].mxu1  ;;  %v131_v23 = vpop.f32.mrb[1].mxu0 }
  0xe1   :  { %v132_v24 = vadd.f32 %v1559_v17, %v131_v23 }
  0xe2   :  { %172 = vst.msk [vmem:[#allocation2 + $0x8] sm:$0xff] %vm170_vm2, %v137_v21  ;;  %272 = vrot.lane.b32.xlu0 %v261_v20, %s1461_s4 }
  0xe3   :  { %171 = vst.msk [vmem:[#allocation2] sm:$0xff] %vm170_vm2, %v132_v24  ;;  %v1227_v4 = vpop.f32.mrb[2].mxu0 }
  0xe4   :  { %v147_v5 = vadd.f32 %v1227_v4, %v1559_v17  ;;  %v141_v6 = vpop.f32.mrb[3].mxu0 }
  0xe5   :  { %v142_v7 = vadd.f32 %v1559_v17, %v141_v6 }
  0xe6   :  { %174 = vst.msk [vmem:[#allocation2 + $0x18] sm:$0xff] %vm170_vm2, %v147_v5 }
  0xe7   :  { %173 = vst.msk [vmem:[#allocation2 + $0x10] sm:$0xff] %vm170_vm2, %v142_v7  ;;  %v1230_v10 = vpop.f32.mrb[4].mxu0 }
  0xe8   :  { %v157_v11 = vadd.f32 %v1230_v10, %v1559_v17  ;;  %v151_v12 = vpop.f32.mrb[5].mxu0 }
  0xe9   :  { %v296_v45 = vld [vmem:[#allocation2 + $0x8] sm:$0xff]  ;;  %v152_v13 = vadd.f32 %v1559_v17, %v151_v12 }
  0xea   :  { %v179_v25 = vld [vmem:[#allocation2] sm:$0xff]  ;;  %176 = vst.msk [vmem:[#allocation2 + $0x28] sm:$0xff] %vm170_vm2, %v157_v11 }
  0xeb   :  { %v264_v26 = vadd.f32 %v261_v20, %v179_v25  ;;  %175 = vst.msk [vmem:[#allocation2 + $0x20] sm:$0xff] %vm170_vm2, %v152_v13  ;;  %v1233_v15 = vpop.f32.mrb[6].mxu0 }
  0xec   :  { %v167_v18 = vadd.f32 %v1233_v15, %v1559_v17  ;;  %v161_v19 = vpop.f32.mrb[7].mxu0 }
  0xed   :  { %v1140_v27 = vmul.f32 -1.442695, %v264_v26  ;;  %v162_v20 = vadd.f32 %v1559_v17, %v161_v19 }
  0xee   :  { %178 = vst.msk [vmem:[#allocation2 + $0x38] sm:$0xff] %vm170_vm2, %v167_v18  ;;  %v413_v24 = vld [vmem:[#allocation2 + $0x10] sm:$0xff] }
  0xef   :  { %1386 = vpow2.f32 %v1140_v27  ;;  %177 = vst.msk [vmem:[#allocation2 + $0x30] sm:$0xff] %vm170_vm2, %v162_v20 }
  0xf9   :  { %v1387_v28 = vpop.eup %1386 }
  0xfa   :  { %v268_v29 = vadd.f32 1.0, %v1387_v28 }
  0xfc   :  { %1388 = vrcp.f32 %v268_v29 }
 0x106   :  { %v1389_v30 = vpop.eup %1388 }
 0x107   :  { %v282_v36 = vsub.f32 1.0, %v1389_v30  ;;  %v288_v38 = vmul.f32 0.0, %v1389_v30 }
 0x154   :  { %v273_v31 = vpop.permute.xlu0 %272 }
 0x155   :  { %v275_v32 = vmul.f32 %v1389_v30, %v273_v31 }
 0x157   :  { %277 = vrot.lane.b32.xlu0 %v275_v32, %s1461_s4 }
 0x1c9   :  { %v278_v33 = vpop.permute.xlu0 %277 }
 0x1ca   :  { %v280_v34 = vadd.f32 %v278_v33, %v179_v25 }
 0x1cc   :  { %1390 = vtanh.f32 %v280_v34 }
 0x1d6   :  { %v1391_v35 = vpop.eup %1390 }
 0x1d7   :  { %284 = vrot.lane.b32.xlu1 %v1391_v35, %s1462_s3 }
 0x249   :  { %v285_v37 = vpop.permute.xlu1 %284 }
 0x24a   :  { %v287_v39 = vmul.f32 %v285_v37, %v282_v36 }
 0x24c   :  { %v289_v40 = vadd.f32 %v288_v38, %v287_v39 }
 0x24e   :  { %291 = vrot.lane.b32.xlu1 %v289_v40, %s1462_s3 }
 0x2c0   :  { %v292_v41 = vpop.permute.xlu1 %291 }
 0x2c1   :  { %294 = vst.msk [vmem:[#allocation3] sm:$0xff] %vm40_vm1, %v292_v41  ;;  %1254 = vmatmul.mubr.msk.f32.vlgmr.msra.gmra.mrb[2].mxu1 %vm40_vm1, %v292_v41 }
 0x2c2   :  { %1350 = vmatpush3.bf16.msra.mxu1 %v1517_v9  ;;  %1275 = vmatprep.mubr.msk.f32.mxu1 %vm1459_vm0, %v1460_v8 }
 0x2c3   :  { %1351 = vmatprep.subr.bf16.mxu1 %v1458_v3 }
 0x2c6   :  { %1353 = vmatpush3.bf16.msra.mxu1 %v1530_v14 }
 0x2c7   :  { %1360 = vmatprep.subr.bf16.mxu1 %v1458_v3 }
 0x394   :  { %v376_v42 = vpop.f32.mrb[2].mxu1 }
 0x395   :  { %v377_v43 = vadd.f32 %v1554_v16, %v376_v42  ;;  %v1255_v44 = vpop.f32.mrb[3].mxu1 }
 0x396   :  { %v530_v44 = vld [vmem:[#allocation2 + $0x18] sm:$0xff] }
 0x397   :  { %388 = vrot.lane.b32.xlu0 %v377_v43, %s1461_s4  ;;  %v380_v46 = vadd.f32 %v377_v43, %v296_v45 }
 0x399   :  { %v1143_v47 = vmul.f32 -1.442695, %v380_v46 }
 0x39b   :  { %1392 = vpow2.f32 %v1143_v47 }
 0x3a5   :  { %v1393_v48 = vpop.eup %1392 }
 0x3a6   :  { %v384_v49 = vadd.f32 1.0, %v1393_v48 }
 0x3a8   :  { %1394 = vrcp.f32 %v384_v49 }
 0x3b2   :  { %v1395_v50 = vpop.eup %1394 }
 0x3b3   :  { %v398_v62 = vsub.f32 1.0, %v1395_v50  ;;  %v404_v0 = vmul.f32 %v1395_v50, %v289_v40 }
 0x409   :  { %v389_v51 = vpop.permute.xlu0 %388 }
 0x40a   :  { %v391_v52 = vmul.f32 %v1395_v50, %v389_v51 }
 0x40c   :  { %393 = vrot.lane.b32.xlu1 %v391_v52, %s1461_s4 }
 0x47e   :  { %v394_v53 = vpop.permute.xlu1 %393 }
 0x47f   :  { %v396_v54 = vadd.f32 %v394_v53, %v296_v45 }
 0x481   :  { %1396 = vtanh.f32 %v396_v54 }
 0x48b   :  { %v1397_v61 = vpop.eup %1396 }
 0x48c   :  { %400 = vrot.lane.b32.xlu0 %v1397_v61, %s1462_s3 }
 0x4fe   :  { %v401_v63 = vpop.permute.xlu0 %400 }
 0x4ff   :  { %v403_v1 = vmul.f32 %v401_v63, %v398_v62 }
 0x501   :  { %v405_v2 = vadd.f32 %v404_v0, %v403_v1  ;;  %v647_v0 = vld [vmem:[#allocation2 + $0x20] sm:$0xff] }
 0x503   :  { %407 = vrot.lane.b32.xlu1 %v405_v2, %s1462_s3 }
 0x575   :  { %v408_v21 = vpop.permute.xlu1 %407 }
 0x576   :  { %411 = vst.msk [vmem:[#allocation3 + $0x8] sm:$0xff] %vm40_vm1, %v408_v21  ;;  %1265 = vmatmul.mubr.msk.f32.vlgmr.msra.gmra.mrb[8].mxu0 %vm40_vm1, %v408_v21 }
 0x577   :  { %1356 = vmatpush3.bf16.msra.mxu0 %v1517_v9  ;;  %1286 = vmatprep.mubr.msk.f32.mxu0 %vm1459_vm0, %v1460_v8 }
 0x578   :  { %1357 = vmatprep.subr.bf16.mxu0 %v1458_v3 }
 0x57b   :  { %1359 = vmatpush3.bf16.msra.mxu0 %v1530_v14 }
 0x57c   :  { %1366 = vmatprep.subr.bf16.mxu0 %v1458_v3 }
 0x649   :  { %v493_v17 = vpop.f32.mrb[8].mxu0 }
 0x64a   :  { %v494_v22 = vadd.f32 %v1554_v16, %v493_v17  ;;  %v1266_v23 = vpop.f32.mrb[9].mxu0 }
 0x64c   :  { %505 = vrot.lane.b32.xlu0 %v494_v22, %s1461_s4  ;;  %v497_v25 = vadd.f32 %v494_v22, %v413_v24 }
 0x64e   :  { %v1146_v26 = vmul.f32 -1.442695, %v497_v25  ;;  %v764_v25 = vld [vmem:[#allocation2 + $0x28] sm:$0xff] }
 0x650   :  { %1398 = vpow2.f32 %v1146_v26 }
 0x65a   :  { %v1399_v27 = vpop.eup %1398 }
 0x65b   :  { %v501_v28 = vadd.f32 1.0, %v1399_v27 }
 0x65d   :  { %1400 = vrcp.f32 %v501_v28 }
 0x667   :  { %v1401_v29 = vpop.eup %1400 }
 0x668   :  { %v515_v35 = vsub.f32 1.0, %v1401_v29  ;;  %v521_v37 = vmul.f32 %v1401_v29, %v405_v2 }
 0x6be   :  { %v506_v30 = vpop.permute.xlu0 %505 }
 0x6bf   :  { %v508_v31 = vmul.f32 %v1401_v29, %v506_v30 }
 0x6c1   :  { %510 = vrot.lane.b32.xlu1 %v508_v31, %s1461_s4 }
 0x733   :  { %v511_v32 = vpop.permute.xlu1 %510 }
 0x734   :  { %v513_v33 = vadd.f32 %v511_v32, %v413_v24 }
 0x736   :  { %1402 = vtanh.f32 %v513_v33 }
 0x740   :  { %v1403_v34 = vpop.eup %1402 }
 0x741   :  { %517 = vrot.lane.b32.xlu0 %v1403_v34, %s1462_s3 }
 0x7b3   :  { %v518_v36 = vpop.permute.xlu0 %517 }
 0x7b4   :  { %v520_v38 = vmul.f32 %v518_v36, %v515_v35 }
 0x7b6   :  { %v522_v39 = vadd.f32 %v521_v37, %v520_v38 }
 0x7b8   :  { %524 = vrot.lane.b32.xlu1 %v522_v39, %s1462_s3 }
 0x82a   :  { %v525_v40 = vpop.permute.xlu1 %524 }
 0x82b   :  { %528 = vst.msk [vmem:[#allocation3 + $0x10] sm:$0xff] %vm40_vm1, %v525_v40  ;;  %1276 = vmatmul.mubr.msk.f32.vlgmr.msra.gmra.mrb[4].mxu1 %vm40_vm1, %v525_v40 }
 0x82c   :  { %1362 = vmatpush3.bf16.msra.mxu1 %v1517_v9  ;;  %1297 = vmatprep.mubr.msk.f32.mxu1 %vm1459_vm0, %v1460_v8 }
 0x82d   :  { %1363 = vmatprep.subr.bf16.mxu1 %v1458_v3 }
 0x830   :  { %1365 = vmatpush3.bf16.msra.mxu1 %v1530_v14 }
 0x831   :  { %1372 = vmatprep.subr.bf16.mxu1 %v1458_v3 }
 0x8fe   :  { %v610_v41 = vpop.f32.mrb[4].mxu1 }
 0x8ff   :  { %v611_v42 = vadd.f32 %v1554_v16, %v610_v41  ;;  %v1277_v43 = vpop.f32.mrb[5].mxu1  ;;  %v881_v41 = vld [vmem:[#allocation2 + $0x30] sm:$0xff] }
 0x901   :  { %622 = vrot.lane.b32.xlu0 %v611_v42, %s1461_s4  ;;  %v614_v45 = vadd.f32 %v611_v42, %v530_v44 }
 0x903   :  { %v1149_v46 = vmul.f32 -1.442695, %v614_v45 }
 0x905   :  { %1404 = vpow2.f32 %v1149_v46 }
 0x90f   :  { %v1405_v47 = vpop.eup %1404 }
 0x910   :  { %v618_v48 = vadd.f32 1.0, %v1405_v47 }
 0x912   :  { %1406 = vrcp.f32 %v618_v48 }
 0x91c   :  { %v1407_v49 = vpop.eup %1406 }
 0x91d   :  { %v632_v55 = vsub.f32 1.0, %v1407_v49  ;;  %v638_v57 = vmul.f32 %v1407_v49, %v522_v39 }
 0x973   :  { %v623_v50 = vpop.permute.xlu0 %622 }
 0x974   :  { %v625_v51 = vmul.f32 %v1407_v49, %v623_v50 }
 0x976   :  { %627 = vrot.lane.b32.xlu1 %v625_v51, %s1461_s4 }
 0x9e8   :  { %v628_v52 = vpop.permute.xlu1 %627 }
 0x9e9   :  { %v630_v53 = vadd.f32 %v628_v52, %v530_v44 }
 0x9eb   :  { %1408 = vtanh.f32 %v630_v53 }
 0x9f5   :  { %v1409_v54 = vpop.eup %1408 }
 0x9f6   :  { %634 = vrot.lane.b32.xlu0 %v1409_v54, %s1462_s3 }
 0xa68   :  { %v635_v56 = vpop.permute.xlu0 %634 }
 0xa69   :  { %v637_v58 = vmul.f32 %v635_v56, %v632_v55 }
 0xa6b   :  { %v639_v59 = vadd.f32 %v638_v57, %v637_v58 }
 0xa6d   :  { %641 = vrot.lane.b32.xlu1 %v639_v59, %s1462_s3 }
 0xadf   :  { %v642_v60 = vpop.permute.xlu1 %641 }
 0xae0   :  { %645 = vst.msk [vmem:[#allocation3 + $0x18] sm:$0xff] %vm40_vm1, %v642_v60  ;;  %1287 = vmatmul.mubr.msk.f32.vlgmr.msra.gmra.mrb[10].mxu0 %vm40_vm1, %v642_v60 }
 0xae1   :  { %1368 = vmatpush3.bf16.msra.mxu0 %v1517_v9  ;;  %1308 = vmatprep.mubr.msk.f32.mxu0 %vm1459_vm0, %v1460_v8 }
 0xae2   :  { %1369 = vmatprep.subr.bf16.mxu0 %v1458_v3 }
 0xae5   :  { %1371 = vmatpush3.bf16.msra.mxu0 %v1530_v14 }
 0xbb3   :  { %v727_v61 = vpop.f32.mrb[10].mxu0 }
 0xbb4   :  { %v728_v62 = vadd.f32 %v1554_v16, %v727_v61  ;;  %v1288_v63 = vpop.f32.mrb[11].mxu0  ;;  %v998_v61 = vld [vmem:[#allocation2 + $0x38] sm:$0xff] }
 0xbb6   :  { %739 = vrot.lane.b32.xlu0 %v728_v62, %s1461_s4  ;;  %v731_v1 = vadd.f32 %v728_v62, %v647_v0 }
 0xbb8   :  { %v1152_v2 = vmul.f32 -1.442695, %v731_v1 }
 0xbba   :  { %1410 = vpow2.f32 %v1152_v2 }
 0xbc4   :  { %v1411_v4 = vpop.eup %1410 }
 0xbc5   :  { %v735_v5 = vadd.f32 1.0, %v1411_v4 }
 0xbc7   :  { %1412 = vrcp.f32 %v735_v5 }
 0xbd1   :  { %v1413_v6 = vpop.eup %1412 }
 0xbd2   :  { %v749_v15 = vsub.f32 1.0, %v1413_v6  ;;  %v755_v19 = vmul.f32 %v1413_v6, %v639_v59 }
 0xc28   :  { %v740_v7 = vpop.permute.xlu0 %739 }
 0xc29   :  { %v742_v10 = vmul.f32 %v1413_v6, %v740_v7 }
 0xc2b   :  { %744 = vrot.lane.b32.xlu1 %v742_v10, %s1461_s4 }
 0xc9d   :  { %v745_v11 = vpop.permute.xlu1 %744 }
 0xc9e   :  { %v747_v12 = vadd.f32 %v745_v11, %v647_v0 }
 0xca0   :  { %1414 = vtanh.f32 %v747_v12 }
 0xcaa   :  { %v1415_v13 = vpop.eup %1414 }
 0xcab   :  { %751 = vrot.lane.b32.xlu0 %v1415_v13, %s1462_s3 }
 0xd1d   :  { %v752_v18 = vpop.permute.xlu0 %751 }
 0xd1e   :  { %v754_v20 = vmul.f32 %v752_v18, %v749_v15 }
 0xd20   :  { %v756_v21 = vadd.f32 %v755_v19, %v754_v20 }
 0xd22   :  { %758 = vrot.lane.b32.xlu1 %v756_v21, %s1462_s3 }
 0xd94   :  { %v759_v17 = vpop.permute.xlu1 %758 }
 0xd95   :  { %762 = vst.msk [vmem:[#allocation3 + $0x20] sm:$0xff] %vm40_vm1, %v759_v17  ;;  %1298 = vmatmul.mubr.msk.f32.vlgmr.msra.gmra.mrb[6].mxu1 %vm40_vm1, %v759_v17 }
 0xd96   :  { %1374 = vmatpush3.bf16.msra.mxu1 %v1517_v9  ;;  %1319 = vmatprep.mubr.msk.f32.mxu1 %vm1459_vm0, %v1460_v8 }
 0xd97   :  { %1375 = vmatprep.subr.bf16.mxu1 %v1458_v3 }
 0xd9a   :  { %1377 = vmatpush3.bf16.msra.mxu1 %v1530_v14 }
 0xe68   :  { %v844_v22 = vpop.f32.mrb[6].mxu1 }
 0xe69   :  { %v845_v23 = vadd.f32 %v1554_v16, %v844_v22  ;;  %v1299_v24 = vpop.f32.mrb[7].mxu1 }
 0xe6b   :  { %856 = vrot.lane.b32.xlu0 %v845_v23, %s1461_s4  ;;  %v848_v26 = vadd.f32 %v845_v23, %v764_v25 }
 0xe6d   :  { %v1155_v27 = vmul.f32 -1.442695, %v848_v26 }
 0xe6f   :  { %1416 = vpow2.f32 %v1155_v27 }
 0xe79   :  { %v1417_v28 = vpop.eup %1416 }
 0xe7a   :  { %v852_v29 = vadd.f32 1.0, %v1417_v28 }
 0xe7c   :  { %1418 = vrcp.f32 %v852_v29 }
 0xe86   :  { %v1419_v9 = vpop.eup %1418 }
 0xe87   :  { %v866_v32 = vsub.f32 1.0, %v1419_v9  ;;  %v872_v34 = vmul.f32 %v1419_v9, %v756_v21 }
 0xedd   :  { %v857_v30 = vpop.permute.xlu0 %856 }
 0xede   :  { %v859_v8 = vmul.f32 %v1419_v9, %v857_v30 }
 0xee0   :  { %861 = vrot.lane.b32.xlu1 %v859_v8, %s1461_s4 }
 0xf52   :  { %v862_v3 = vpop.permute.xlu1 %861 }
 0xf53   :  { %v864_v14 = vadd.f32 %v862_v3, %v764_v25 }
 0xf55   :  { %1420 = vtanh.f32 %v864_v14 }
 0xf5f   :  { %v1421_v31 = vpop.eup %1420 }
 0xf60   :  { %868 = vrot.lane.b32.xlu0 %v1421_v31, %s1462_s3 }
 0xfd2   :  { %v869_v33 = vpop.permute.xlu0 %868 }
 0xfd3   :  { %v871_v35 = vmul.f32 %v869_v33, %v866_v32 }
 0xfd5   :  { %v873_v36 = vadd.f32 %v872_v34, %v871_v35 }
 0xfd7   :  { %875 = vrot.lane.b32.xlu1 %v873_v36, %s1462_s3 }
0x1049   :  { %v876_v37 = vpop.permute.xlu1 %875 }
0x104a   :  { %879 = vst.msk [vmem:[#allocation3 + $0x28] sm:$0xff] %vm40_vm1, %v876_v37  ;;  %1309 = vmatmul.mubr.msk.f32.vlgmr.msra.gmra.mrb[12].mxu0 %vm40_vm1, %v876_v37 }
0x111d   :  { %v961_v38 = vpop.f32.mrb[12].mxu0 }
0x111e   :  { %v962_v39 = vadd.f32 %v1554_v16, %v961_v38  ;;  %v1310_v40 = vpop.f32.mrb[13].mxu0 }
0x1120   :  { %973 = vrot.lane.b32.xlu0 %v962_v39, %s1461_s4  ;;  %v965_v42 = vadd.f32 %v962_v39, %v881_v41 }
0x1122   :  { %v1158_v43 = vmul.f32 -1.442695, %v965_v42 }
0x1124   :  { %1422 = vpow2.f32 %v1158_v43 }
0x112e   :  { %v1423_v44 = vpop.eup %1422 }
0x112f   :  { %v969_v45 = vadd.f32 1.0, %v1423_v44 }
0x1131   :  { %1424 = vrcp.f32 %v969_v45 }
0x113b   :  { %v1425_v46 = vpop.eup %1424 }
0x113c   :  { %v983_v52 = vsub.f32 1.0, %v1425_v46  ;;  %v989_v54 = vmul.f32 %v1425_v46, %v873_v36 }
0x1192   :  { %v974_v47 = vpop.permute.xlu0 %973 }
0x1193   :  { %v976_v48 = vmul.f32 %v1425_v46, %v974_v47 }
0x1195   :  { %978 = vrot.lane.b32.xlu1 %v976_v48, %s1461_s4 }
0x1207   :  { %v979_v49 = vpop.permute.xlu1 %978 }
0x1208   :  { %v981_v50 = vadd.f32 %v979_v49, %v881_v41 }
0x120a   :  { %1426 = vtanh.f32 %v981_v50 }
0x1214   :  { %v1427_v51 = vpop.eup %1426 }
0x1215   :  { %985 = vrot.lane.b32.xlu0 %v1427_v51, %s1462_s3 }
0x1287   :  { %v986_v53 = vpop.permute.xlu0 %985 }
0x1288   :  { %v988_v55 = vmul.f32 %v986_v53, %v983_v52 }
0x128a   :  { %v990_v56 = vadd.f32 %v989_v54, %v988_v55 }
0x128c   :  { %992 = vrot.lane.b32.xlu1 %v990_v56, %s1462_s3 }
0x12fe   :  { %v993_v57 = vpop.permute.xlu1 %992 }
0x12ff   :  { %996 = vst.msk [vmem:[#allocation3 + $0x30] sm:$0xff] %vm40_vm1, %v993_v57  ;;  %1320 = vmatmul.mubr.msk.f32.vlgmr.msra.gmra.mrb[8].mxu1 %vm40_vm1, %v993_v57 }
0x13d2   :  { %v1078_v58 = vpop.f32.mrb[8].mxu1 }
0x13d3   :  { %v1079_v59 = vadd.f32 %v1554_v16, %v1078_v58  ;;  %v1321_v60 = vpop.f32.mrb[9].mxu1 }
0x13d5   :  { %1090 = vrot.lane.b32.xlu0 %v1079_v59, %s1461_s4  ;;  %v1082_v62 = vadd.f32 %v1079_v59, %v998_v61 }
0x13d7   :  { %v1161_v63 = vmul.f32 -1.442695, %v1082_v62 }
0x13d9   :  { %1428 = vpow2.f32 %v1161_v63 }
0x13e3   :  { %v1429_v0 = vpop.eup %1428 }
0x13e4   :  { %v1086_v1 = vadd.f32 1.0, %v1429_v0 }
0x13e6   :  { %1430 = vrcp.f32 %v1086_v1 }
0x13f0   :  { %v1431_v2 = vpop.eup %1430 }
0x13f1   :  { %v1100_v16 = vsub.f32 1.0, %v1431_v2  ;;  %v1106_v12 = vmul.f32 %v1431_v2, %v990_v56 }
0x1447   :  { %v1091_v4 = vpop.permute.xlu0 %1090 }
0x1448   :  { %v1093_v5 = vmul.f32 %v1431_v2, %v1091_v4 }
0x144a   :  { %1095 = vrot.lane.b32.xlu1 %v1093_v5, %s1461_s4 }
0x14bc   :  { %v1096_v6 = vpop.permute.xlu1 %1095 }
0x14bd   :  { %v1098_v7 = vadd.f32 %v1096_v6, %v998_v61 }
0x14bf   :  { %1432 = vtanh.f32 %v1098_v7 }
0x14c9   :  { %v1433_v10 = vpop.eup %1432 }
0x14ca   :  { %1102 = vrot.lane.b32.xlu0 %v1433_v10, %s1462_s3 }
0x153c   :  { %v1103_v11 = vpop.permute.xlu0 %1102 }
0x153d   :  { %v1105_v13 = vmul.f32 %v1103_v11, %v1100_v16 }
0x153f   :  { %v1107_v15 = vadd.f32 %v1106_v12, %v1105_v13 }
0x1541   :  { %1109 = vrot.lane.b32.xlu1 %v1107_v15, %s1462_s3 }
0x15b3   :  { %v1110_v18 = vpop.permute.xlu1 %1109 }
0x15b4   :  { %1113 = vst.msk [vmem:[#allocation3 + $0x38] sm:$0xff] %vm40_vm1, %v1110_v18 }
0x15b5   :  { %1445 = shalt.err (!%p1442_p4)
}
0x15b6   :  { %s1446_s6 = scalar_lea.hbm %s1703_s5, 1024 }
0x15b7   :  { %p1447_p5 = scmp.ne.s32.totalorder %s1703_s5, %s1446_s6  ;;  %p1450_p6 = scmp.lt.u32.totalorder %s1446_s6, %s1703_s5 }
0x15b9   :  { %p1452_p7 = pnand %p1450_p6, %p1447_p5 }
0x15bb   :  { %1455 = shalt.err (!%p1452_p7)
}
0x15bc   :  { %s1464_s1 = smov 128   ;;  %s1465_s2 = smov 8  }
0x15bd   :  { %1125 = dma.vmem_to_hbm [thread:$0]  %s1120_s27, 1024, %s1703_s5, [#allocation4], %s1464_s1, %s1464_s1, %s1465_s2  }
0x15be   :  { %1456 = dma.done.wait [#allocation4], 1024  }
0x15bf   :  { %1457 = vsyncadd [#allocation4], 4294966272 }
0x15c0   :  { %1129 = vsyncpa [#allocation4], 1 }

</bundles_post_ra>
